<compile_context>
chip_gen: v7x
topology: tpu7x:2x2x1
jax: 0.10.0
libtpu: 0.0.40
codegen_flags: <defaults>
</compile_context>

<pallas_src>
import jax
import jax.numpy as jnp
from jax.experimental import pallas as pl
from jax.experimental.pallas import tpu as pltpu


def _round_up(x, m):
    return ((x + m - 1) // m) * m


def bpr_score_kernel(u_ref, v_ref, b_ref, o_ref):
    # u_ref, v_ref: (TB, F) VMEM tiles; b_ref, o_ref: (TB, 1) VMEM tiles.
    u = u_ref[...].astype(jnp.float32)
    v = v_ref[...].astype(jnp.float32)
    # VPU elementwise multiply + XLU lane-reduce; both ride free VLIW slots on
    # an HBM-bound kernel.
    s = jnp.sum(u * v, axis=1, keepdims=True) + b_ref[...].astype(jnp.float32)
    o_ref[...] = s.astype(o_ref.dtype)


def bpr_forward(user_factors, item_factors, item_bias, user_ids, item_ids,
                *, max_tb=1024):
    """Pallas TPU implementation of BPR_implicit_model.forward."""
    B = user_ids.shape[0]
    F = user_factors.shape[1]

    # Large batch tiles amortize per-grid-step overhead; clamp to the
    # sublane-aligned batch so tiny batches still give a legal (>=8-row) tile.
    tb = min(max_tb, _round_up(B, 8))
    b_pad = _round_up(B, tb)

    if b_pad != B:
        # Pad the id vectors (index 0 is always valid) instead of padding the
        # gathered [B, F] arrays -- avoids an extra pass over the activations.
        user_ids = jnp.pad(user_ids, (0, b_pad - B))
        item_ids = jnp.pad(item_ids, (0, b_pad - B))

    # Embedding row gathers stay in XLA.
    # TODO(synk): fuse the gather into the kernel (scalar-prefetched ids +
    # in-kernel row gather / manual DMA) to cut HBM traffic roughly in half.
    u = jnp.take(user_factors, user_ids, axis=0)   # [B_pad, F]
    v = jnp.take(item_factors, item_ids, axis=0)   # [B_pad, F]
    b = jnp.take(item_bias, item_ids, axis=0)      # [B_pad, 1]

    out = pl.pallas_call(
        bpr_score_kernel,
        out_shape=jax.ShapeDtypeStruct((b_pad, 1), u.dtype),
        grid_spec=pltpu.PrefetchScalarGridSpec(
            num_scalar_prefetch=0,
            grid=(b_pad // tb,),
            in_specs=[
                pl.BlockSpec((tb, F), lambda i: (i, 0)),
                pl.BlockSpec((tb, F), lambda i: (i, 0)),
                pl.BlockSpec((tb, 1), lambda i: (i, 0)),
            ],
            out_specs=pl.BlockSpec((tb, 1), lambda i: (i, 0)),
        ),
        compiler_params=pltpu.CompilerParams(
            dimension_semantics=("parallel",),          # megacore-shard batch tiles
            vmem_limit_bytes=32 * 1024 * 1024,          # keep large tiles legal on v5e
        ),
    )(u, v, b)

    return out[:B, 0]   # [B], matches torch .squeeze()


if __name__ == "__main__":
    # Deterministic synthetic parameters (std=0.01 normal init, like the module).
    num_users, num_items, n_features = 64, 48, 128

    key = jax.random.PRNGKey(0)
    k_uf, k_if, k_ib, k_uid, k_iid = jax.random.split(key, 5)

    user_factors = 0.01 * jax.random.normal(k_uf, (num_users, n_features), jnp.float32)
    item_factors = 0.01 * jax.random.normal(k_if, (num_items, n_features), jnp.float32)
    item_bias    = 0.01 * jax.random.normal(k_ib, (num_items, 1), jnp.float32)

    def reference(uid, iid):
        return jnp.sum(user_factors[uid] * item_factors[iid], axis=1) + item_bias[iid][:, 0]

    # Case 1: small batch (single grid step; tile clamps to the batch).
    batch = 16
    uid = jax.random.randint(k_uid, (batch,), 0, num_users, dtype=jnp.int32)
    iid = jax.random.randint(k_iid, (batch,), 0, num_items, dtype=jnp.int32)
    preds = jax.block_until_ready(
        bpr_forward(user_factors, item_factors, item_bias, uid, iid))
    assert preds.shape == (batch,)
    assert jnp.allclose(preds, reference(uid, iid), atol=1e-6, rtol=1e-5)

    # Case 2: non-divisible batch + multi-step grid (exercises padding path).
    batch2 = 20
    uid2 = jax.random.randint(k_uid, (batch2,), 0, num_users, dtype=jnp.int32)
    iid2 = jax.random.randint(k_iid, (batch2,), 0, num_items, dtype=jnp.int32)
    preds2 = jax.block_until_ready(
        bpr_forward(user_factors, item_factors, item_bias, uid2, iid2, max_tb=8))
    assert preds2.shape == (batch2,)
    assert jnp.allclose(preds2, reference(uid2, iid2), atol=1e-6, rtol=1e-5)

    print("KERNEL_OK")
</pallas_src>

<mosaic_0001>
module attributes {stable_mosaic.version = 11 : i64} {
  func.func @bpr_score_kernel(%arg0: i32, %arg1: memref<16x128xf32, #tpu.memory_space<vmem>>, %arg2: memref<16x128xf32, #tpu.memory_space<vmem>>, %arg3: memref<16x1xf32, #tpu.memory_space<vmem>>, %arg4: memref<16x1xf32, #tpu.memory_space<vmem>>) attributes {dimension_semantics = [#tpu.dimension_semantics<parallel>], iteration_bounds = array<i64: 1>, scalar_prefetch = 0 : i64, scratch_operands = 0 : i64, tpu.core_type = #tpu.core_type<tc>, window_params = [{transform_indices = @transform_0, window_bounds = array<i64: 16, 128>}, {transform_indices = @transform_1, window_bounds = array<i64: 16, 128>}, {transform_indices = @transform_2, window_bounds = array<i64: 16, 1>}, {transform_indices = @transform_3, window_bounds = array<i64: 16, 1>}]} {
    %c0 = arith.constant 0 : index
    %c0_0 = arith.constant 0 : index
    %0 = vector.load %arg1[%c0, %c0_0] : memref<16x128xf32, #tpu.memory_space<vmem>>, vector<16x128xf32>
    %c0_1 = arith.constant 0 : index
    %c0_2 = arith.constant 0 : index
    %1 = vector.load %arg2[%c0_1, %c0_2] : memref<16x128xf32, #tpu.memory_space<vmem>>, vector<16x128xf32>
    %2 = arith.mulf %0, %1 : vector<16x128xf32>
    %cst = arith.constant dense<0.000000e+00> : vector<16xf32>
    %3 = vector.multi_reduction <add>, %2, %cst [1] : vector<16x128xf32> to vector<16xf32>
    %4 = vector.shape_cast %3 : vector<16xf32> to vector<16x1xf32>
    %c0_3 = arith.constant 0 : index
    %c0_4 = arith.constant 0 : index
    %5 = vector.load %arg3[%c0_3, %c0_4] : memref<16x1xf32, #tpu.memory_space<vmem>>, vector<16x1xf32>
    %6 = arith.addf %4, %5 : vector<16x1xf32>
    %c0_5 = arith.constant 0 : index
    %c0_6 = arith.constant 0 : index
    %7 = vector.load %arg4[%c0_5, %c0_6] : memref<16x1xf32, #tpu.memory_space<vmem>>, vector<16x1xf32>
    tpu.vector_store %arg4[%c0_5, %c0_6], %6 {strides = array<i32>} : memref<16x1xf32, #tpu.memory_space<vmem>>, vector<16x1xf32>,
    return
  }
  func.func @transform_0(%arg0: i32) -> (i32, i32) {
    %c0_i32 = arith.constant 0 : i32
    %c0_i32_0 = arith.constant 0 : i32
    return %arg0, %c0_i32 : i32, i32
  }
  func.func @transform_1(%arg0: i32) -> (i32, i32) {
    %c0_i32 = arith.constant 0 : i32
    %c0_i32_0 = arith.constant 0 : i32
    return %arg0, %c0_i32 : i32, i32
  }
  func.func @transform_2(%arg0: i32) -> (i32, i32) {
    %c0_i32 = arith.constant 0 : i32
    %c0_i32_0 = arith.constant 0 : i32
    return %arg0, %c0_i32 : i32, i32
  }
  func.func @transform_3(%arg0: i32) -> (i32, i32) {
    %c0_i32 = arith.constant 0 : i32
    %c0_i32_0 = arith.constant 0 : i32
    return %arg0, %c0_i32 : i32, i32
  }
}

</mosaic_0001>

<bundles_post_ra>
// kernel: tpu_custom_call.1
= control target key start
LH: loop header
LB: loop body
LE: loop exit
PB: predicated region body
PF: predicated region fallthrough
CT: control target
= control target key end

     0   :  { %8 = vsyncpa [#allocation3], 0  ;;  %s77_s12 = smov [#allocation2]   ;;  %s130_s0 = inlined_call_operand.vmem [shape: f32[16,128], index: 0, kind: input, shape index: {}]   ;;  %s131_s1 = inlined_call_operand.hbm [shape: f32[16,128], index: 1, kind: input, shape index: {}]   ;;  %s132_s2 = inlined_call_operand.vmem [shape: f32[16,1], index: 2, kind: input, shape index: {}]   ;;  %s133_s3 = inlined_call_operand.vmem [shape: f32[16,1], index: 3, kind: output, shape index: {}]  }
   0x1   :  { %s16_s13 = sshll.u32 %s77_s12, 4  ;;  %s53_s16 = scalar_lea.hbm %s131_s1, 256  ;;  %s17_s13 = int_to_ptr.vmem [resolvable:$true] %s16_s13 }
   0x2   :  { %p54_p0 = scmp.ne.s32.totalorder %s131_s1, %s53_s16  ;;  %p57_p1 = scmp.lt.u32.totalorder %s53_s16, %s131_s1 }
   0x4   :  { %p59_p2 = pnand %p57_p1, %p54_p0 }
   0x6   :  { %62 = shalt.err (!%p59_p2)
}
   0x7   :  { %s63_s21 = scalar_lea.vmem %s17_s13, 256  ;;  %p68_p4 = scmp.lt.s32.totalorder %s17_s13, %s17_s13 }
   0x8   :  { %p64_p3 = scmp.ne.s32.totalorder %s17_s13, %s63_s21  ;;  %p69_p5 = scmp.lt.s32.totalorder %s63_s21, %s63_s21 }
   0xa   :  { %p70_p6 = por %p69_p5, %p68_p4 }
   0xc   :  { %p71_p7 = pnand %p70_p6, %p64_p3 }
   0xe   :  { %74 = shalt.err (!%p71_p7)
}
   0xf   :  { %s78_s22 = smov 128   ;;  %s79_s23 = smov 8  }
  0x10   :  { %22 = dma.hbm_to_vmem [thread:$0]  %s131_s1, 256, %s17_s13, [#allocation3], %s78_s22, %s78_s22, %s79_s23  }
  0x11   :  { %75 = dma.done.wait [#allocation3], 256  }
  0x12   :  { %76 = vsyncadd [#allocation3], 4294967040  ;;  %v28_v0 = vld [vmem:[%s130_s0] sm:$0xff]  ;;  %v29_v2 = vld [vmem:[%s130_s0 + $0x8] sm:$0xff]  ;;  %vm42_vm0 = vcmask 7168  }
  0x13   :  { %v30_v1 = vld [vmem:[#allocation2] sm:$0xff]  ;;  %v31_v4 = vld [vmem:[#allocation2 + $0x8] sm:$0xff] }
  0x14   :  { %v32_v3 = vmul.f32 %v30_v1, %v28_v0  ;;  %v33_v5 = vmul.f32 %v31_v4, %v29_v2  ;;  %v38_v6 = vld [vmem:[%s132_s2] sm:$0xff]  ;;  %v39_v9 = vld [vmem:[%s132_s2 + $0x8] sm:$0xff] }
  0x16   :  { %34 = vadd.xlane.f32.xlu0 %v32_v3 }
  0x1a   :  { %36 = vadd.xlane.f32.xlu0 %v33_v5 }
  0xa3   :  { %v35_v7 = vpop.xlane.xlu0 %34 }
  0xa4   :  { %v40_v8 = vadd.f32 %v38_v6, %v35_v7 }
  0xa6   :  { %43 = vst.msk [vmem:[%s133_s3] sm:$0xff] %vm42_vm0, %v40_v8 }
  0xa7   :  { %v37_v10 = vpop.xlane.xlu0 %36 }
  0xa8   :  { %v41_v11 = vadd.f32 %v39_v9, %v37_v10 }
  0xaa   :  { %44 = vst.msk [vmem:[%s133_s3 + $0x8] sm:$0xff] %vm42_vm0, %v41_v11 }
  0xab   :  { %49 = vsyncpa [#allocation3], 1 }

</bundles_post_ra>
